<compile_context>
chip_gen: v6e
topology: v6e:2x2x1
jax: 0.10.0
libtpu: 0.0.40
codegen_flags: <defaults>
</compile_context>

<pallas_src>
import math
import functools

import jax
import jax.numpy as jnp
from jax.experimental import pallas as pl
from jax.experimental.pallas import tpu as pltpu


# ----------------------------------------------------------------------------
# Kernel: one batch element per grid step.  All refs are dense 2-D slabs:
#   x_ref    (S, E)    activation tile for this batch element (compute dtype)
#   wqkv_ref (E, 3E)   fused in-projection weight [Wq | Wk | Wv]   (compute dtype)
#   bqkv_ref (1, 3E)   fused in-projection bias                    (f32)
#   wo_ref   (E, E)    out-projection weight                       (compute dtype)
#   w1_ref   (E, F), b1_ref (1, F), w2_ref (F, E)                  (weights: compute dtype)
#   vec_ref  (8, E)    rows: [bo, gamma1, beta1, gamma2, beta2, b2, pad, pad] (f32)
# ----------------------------------------------------------------------------
def _encoder_layer_kernel(
    x_ref, wqkv_ref, bqkv_ref, wo_ref, w1_ref, b1_ref, w2_ref, vec_ref,
    o_ref, *, nhead: int, eps: float = 1e-5,
):
    S, E = x_ref.shape
    Dh = E // nhead
    scale = 1.0 / math.sqrt(Dh)

    x = x_ref[...]                          # (S, E) compute dtype (f32 or bf16)
    cdt = x.dtype                           # matmul operand dtype
    x_f32 = x.astype(jnp.float32)

    bo = vec_ref[0:1, :]
    g1 = vec_ref[1:2, :]
    be1 = vec_ref[2:3, :]
    g2 = vec_ref[3:4, :]
    be2 = vec_ref[4:5, :]
    b2 = vec_ref[5:6, :]

    def layer_norm(y, g, b):
        # Single-pass statistics: var = E[y^2] - mu^2 (two independent
        # reductions instead of a serial mu -> (y-mu)^2 -> mean chain).
        mu = jnp.mean(y, axis=-1, keepdims=True)
        ms = jnp.mean(y * y, axis=-1, keepdims=True)
        var = jnp.maximum(ms - mu * mu, 0.0)
        return (y - mu) * jax.lax.rsqrt(var + eps) * g + b

    # --- fused QKV in-projection: one MXU matmul, f32 accumulation ------------
    qkv = jnp.dot(x, wqkv_ref[...], preferred_element_type=jnp.float32) + bqkv_ref[...]

    # --- per-head attention, heads concatenated for a single out-projection ---
    heads = []
    for h in range(nhead):
        qh = qkv[:, h * Dh:(h + 1) * Dh] * scale                   # (S, Dh)
        kh = qkv[:, E + h * Dh:E + (h + 1) * Dh]                   # (S, Dh)
        vh = qkv[:, 2 * E + h * Dh:2 * E + (h + 1) * Dh]           # (S, Dh)

        s = jax.lax.dot_general(                                   # qh @ kh^T (NT dot)
            qh.astype(cdt), kh.astype(cdt), (((1,), (1,)), ((), ())),
            preferred_element_type=jnp.float32)                    # (S, S) f32
        s = s - jnp.max(s, axis=-1, keepdims=True)
        p = jnp.exp(s)
        # approx=True: EUP reciprocal, ~1e-3 relative error on the softmax sum.
        p = p * pl.reciprocal(jnp.sum(p, axis=-1, keepdims=True), approx=True)

        heads.append(jnp.dot(p.astype(cdt), vh.astype(cdt),
                             preferred_element_type=jnp.float32))  # (S, Dh) f32

    cat = jnp.concatenate(heads, axis=-1)                          # (S, E) f32
    # ONE full-depth (K=E) out-projection matmul instead of nhead K=Dh passes.
    attn = jnp.dot(cat.astype(cdt), wo_ref[...],
                   preferred_element_type=jnp.float32) + bo        # (S, E) f32

    # --- residual + LayerNorm 1 ----------------------------------------------
    h1 = layer_norm(x_f32 + attn, g1, be1)

    # --- feed-forward: linear1 -> relu -> linear2 ------------------------------
    ff = jnp.dot(h1.astype(cdt), w1_ref[...],
                 preferred_element_type=jnp.float32) + b1_ref[...]
    ff = jnp.maximum(ff, 0.0)
    ff = jnp.dot(ff.astype(cdt), w2_ref[...],
                 preferred_element_type=jnp.float32) + b2

    # --- residual + LayerNorm 2 ----------------------------------------------
    h2 = layer_norm(h1 + ff, g2, be2)

    o_ref[...] = h2.astype(o_ref.dtype)


# ----------------------------------------------------------------------------
# Wrapper: grid over batch, leading squeezed batch dim, weights resident via
# constant index maps (DMA'd once, reused every step).
# ----------------------------------------------------------------------------
@functools.partial(jax.jit, static_argnames=("nhead",))
def transformer_encoder_layer(src_sbe, packed_params, *, nhead):
    S, B, E = src_sbe.shape
    wqkv, bqkv, wo, w1, b1, w2, vecs = packed_params
    compute_dtype = wqkv.dtype            # f32 or bf16 operand path

    # Layout plumbing: seq-first [S,B,E] -> batch-first [B,S,E] so the per-step
    # block is a dense (S,E) slab with (8,128)-clean last two dims.
    x_bse = jnp.transpose(src_sbe, (1, 0, 2)).astype(compute_dtype)

    def const_spec(shape):
        nd = len(shape)
        return pl.BlockSpec(shape, lambda b, _nd=nd: (0,) * _nd)

    x_spec = pl.BlockSpec((None, S, E), lambda b: (b, 0, 0))     # squeezed batch
    o_spec = pl.BlockSpec((None, S, E), lambda b: (b, 0, 0))
    weight_specs = [const_spec(p.shape) for p in (wqkv, bqkv, wo, w1, b1, w2, vecs)]

    out_bse = pl.pallas_call(
        functools.partial(_encoder_layer_kernel, nhead=nhead),
        out_shape=jax.ShapeDtypeStruct((B, S, E), src_sbe.dtype),
        grid_spec=pltpu.PrefetchScalarGridSpec(
            num_scalar_prefetch=0,
            grid=(B,),
            in_specs=[x_spec] + weight_specs,
            out_specs=o_spec,
        ),
        compiler_params=pltpu.CompilerParams(
            # Distinct output block per batch step -> safe to shard across the
            # two v7x TensorCores.
            dimension_semantics=("parallel",),
            # Explicit budget (safe on v5e/v6e/v7x); re-derive per generation
            # when scaling E/F/S (weights double-buffer by default).
            vmem_limit_bytes=32 * 1024 * 1024,
        ),
    )(x_bse, wqkv, bqkv, wo, w1, b1, w2, vecs)

    return jnp.transpose(out_bse, (1, 0, 2))


# ----------------------------------------------------------------------------
# Deterministic parameter construction (synthetic, not a checkpoint load).
# ----------------------------------------------------------------------------
def make_raw_params(key, E, F):
    ks = jax.random.split(key, 8)
    std = 0.05
    wq = jax.random.normal(ks[0], (E, E), jnp.float32) * std   # stored x @ W layout
    wk = jax.random.normal(ks[1], (E, E), jnp.float32) * std
    wv = jax.random.normal(ks[2], (E, E), jnp.float32) * std
    wo = jax.random.normal(ks[3], (E, E), jnp.float32) * std
    w1 = jax.random.normal(ks[4], (E, F), jnp.float32) * std
    w2 = jax.random.normal(ks[5], (F, E), jnp.float32) * std
    bq = jax.random.normal(ks[6], (1, E), jnp.float32) * std
    bk = jnp.zeros((1, E), jnp.float32)
    bv = jax.random.normal(ks[7], (1, E), jnp.float32) * std
    bo = jnp.zeros((1, E), jnp.float32)
    b1 = jnp.zeros((1, F), jnp.float32)
    b2 = jnp.zeros((1, E), jnp.float32)
    g1 = jnp.ones((1, E), jnp.float32)
    be1 = jnp.zeros((1, E), jnp.float32)
    g2 = jnp.ones((1, E), jnp.float32)
    be2 = jnp.zeros((1, E), jnp.float32)
    return (wq, wk, wv, bq, bk, bv, wo, bo, w1, b1, w2, b2, g1, be1, g2, be2)


def pack_params(raw, compute_dtype=jnp.float32):
    """Fuse QKV weights/biases, stack the small per-channel vectors, and cast
    the matmul-operand weights to `compute_dtype` (bf16 path for v6e/v7x MXU).
    Biases / LayerNorm params stay f32 (they feed f32 accumulators)."""
    (wq, wk, wv, bq, bk, bv, wo, bo, w1, b1, w2, b2, g1, be1, g2, be2) = raw
    E = wq.shape[0]
    wqkv = jnp.concatenate([wq, wk, wv], axis=1).astype(compute_dtype)   # (E, 3E)
    bqkv = jnp.concatenate([bq, bk, bv], axis=1)                          # (1, 3E) f32
    vecs = jnp.concatenate(
        [bo, g1, be1, g2, be2, b2, jnp.zeros((2, E), jnp.float32)], axis=0)  # (8, E)
    return (wqkv, bqkv, wo.astype(compute_dtype), w1.astype(compute_dtype),
            b1, w2.astype(compute_dtype), vecs)


# ----------------------------------------------------------------------------
# Pure-JAX reference (mirrors the PyTorch forward in eval mode, f32).
# ----------------------------------------------------------------------------
def reference(src_sbe, raw_params, *, nhead, eps=1e-5):
    (wq, wk, wv, bq, bk, bv, wo, bo, w1, b1, w2, b2, g1, be1, g2, be2) = raw_params
    S, B, E = src_sbe.shape
    Dh = E // nhead
    x = jnp.transpose(src_sbe, (1, 0, 2))                        # (B, S, E)
    q = x @ wq + bq
    k = x @ wk + bk
    v = x @ wv + bv
    q = q.reshape(B, S, nhead, Dh).transpose(0, 2, 1, 3)
    k = k.reshape(B, S, nhead, Dh).transpose(0, 2, 1, 3)
    v = v.reshape(B, S, nhead, Dh).transpose(0, 2, 1, 3)
    s = jnp.einsum("bhqd,bhkd->bhqk", q, k) / math.sqrt(Dh)
    p = jax.nn.softmax(s, axis=-1)
    a = jnp.einsum("bhqk,bhkd->bhqd", p, v).transpose(0, 2, 1, 3).reshape(B, S, E)
    a = a @ wo + bo

    def ln(y, g, b):
        mu = jnp.mean(y, -1, keepdims=True)
        var = jnp.mean((y - mu) ** 2, -1, keepdims=True)
        return (y - mu) / jnp.sqrt(var + eps) * g + b

    h1 = ln(x + a, g1, be1)
    ff = jnp.maximum(h1 @ w1 + b1, 0.0) @ w2 + b2
    h2 = ln(h1 + ff, g2, be2)
    return jnp.transpose(h2, (1, 0, 2))


if __name__ == "__main__":
    # NOTE: toy shapes for the correctness check; realistic perf tiling assumes
    # E, F multiples of 128, S a multiple of 8, Dh >= 64.
    S, B, E, H, F = 8, 2, 32, 4, 64
    key = jax.random.PRNGKey(0)
    kx, kp = jax.random.split(key)
    src = jax.random.normal(kx, (S, B, E), jnp.float32)

    raw = make_raw_params(kp, E, F)
    ref = reference(src, raw, nhead=H)

    # --- f32 operand path ---------------------------------------------------
    out_f32 = transformer_encoder_layer(src, pack_params(raw, jnp.float32), nhead=H)
    out_f32 = jax.block_until_ready(out_f32)
    assert out_f32.shape == (S, B, E)
    # Tolerance covers the EUP approximate softmax reciprocal (~1e-3 relative).
    assert jnp.allclose(out_f32, ref, atol=2e-3, rtol=2e-3), "f32 mismatch vs reference"

    # --- bf16 matmul-operand path (v6e/v7x MXU), f32 accumulation ------------
    out_bf16 = transformer_encoder_layer(src, pack_params(raw, jnp.bfloat16), nhead=H)
    out_bf16 = jax.block_until_ready(out_bf16)
    assert out_bf16.shape == (S, B, E)
    # Loose parity check: quantization of weights/activations to bf16 dominates.
    assert jnp.allclose(out_bf16, ref, atol=1e-1, rtol=1e-1), "bf16 mismatch vs reference"

    print("KERNEL_OK")
</pallas_src>

<mosaic_0001>
module attributes {stable_mosaic.version = 11 : i64} {
  func.func @_encoder_layer_kernel(%arg0: i32, %arg1: memref<1x8x32xf32, #tpu.memory_space<vmem>>, %arg2: memref<32x96xf32, #tpu.memory_space<vmem>>, %arg3: memref<1x96xf32, #tpu.memory_space<vmem>>, %arg4: memref<32x32xf32, #tpu.memory_space<vmem>>, %arg5: memref<32x64xf32, #tpu.memory_space<vmem>>, %arg6: memref<1x64xf32, #tpu.memory_space<vmem>>, %arg7: memref<64x32xf32, #tpu.memory_space<vmem>>, %arg8: memref<8x32xf32, #tpu.memory_space<vmem>>, %arg9: memref<1x8x32xf32, #tpu.memory_space<vmem>>) attributes {dimension_semantics = [#tpu.dimension_semantics<parallel>], iteration_bounds = array<i64: 2>, scalar_prefetch = 0 : i64, scratch_operands = 0 : i64, tpu.core_type = #tpu.core_type<tc>, window_params = [{transform_indices = @transform_0, window_bounds = array<i64: 1, 8, 32>}, {pipeline_mode = #tpu.pipeline_mode<synchronous>, transform_indices = @transform_1, window_bounds = array<i64: 32, 96>}, {pipeline_mode = #tpu.pipeline_mode<synchronous>, transform_indices = @transform_2, window_bounds = array<i64: 1, 96>}, {pipeline_mode = #tpu.pipeline_mode<synchronous>, transform_indices = @transform_3, window_bounds = array<i64: 32, 32>}, {pipeline_mode = #tpu.pipeline_mode<synchronous>, transform_indices = @transform_4, window_bounds = array<i64: 32, 64>}, {pipeline_mode = #tpu.pipeline_mode<synchronous>, transform_indices = @transform_5, window_bounds = array<i64: 1, 64>}, {pipeline_mode = #tpu.pipeline_mode<synchronous>, transform_indices = @transform_6, window_bounds = array<i64: 64, 32>}, {pipeline_mode = #tpu.pipeline_mode<synchronous>, transform_indices = @transform_7, window_bounds = array<i64: 8, 32>}, {transform_indices = @transform_8, window_bounds = array<i64: 1, 8, 32>}]} {
    %c0 = arith.constant 0 : index
    %c0_0 = arith.constant 0 : index
    %c0_1 = arith.constant 0 : index
    %0 = vector.load %arg1[%c0, %c0_0, %c0_1] : memref<1x8x32xf32, #tpu.memory_space<vmem>>, vector<1x8x32xf32>
    %1 = vector.shape_cast %0 : vector<1x8x32xf32> to vector<8x32xf32>
    %c0_2 = arith.constant 0 : index
    %c0_3 = arith.constant 0 : index
    %2 = vector.load %arg8[%c0_2, %c0_3] : memref<8x32xf32, #tpu.memory_space<vmem>>, vector<1x32xf32>
    %c1 = arith.constant 1 : index
    %c0_4 = arith.constant 0 : index
    %3 = vector.load %arg8[%c1, %c0_4] : memref<8x32xf32, #tpu.memory_space<vmem>>, vector<1x32xf32>
    %c2 = arith.constant 2 : index
    %c0_5 = arith.constant 0 : index
    %4 = vector.load %arg8[%c2, %c0_5] : memref<8x32xf32, #tpu.memory_space<vmem>>, vector<1x32xf32>
    %c3 = arith.constant 3 : index
    %c0_6 = arith.constant 0 : index
    %5 = vector.load %arg8[%c3, %c0_6] : memref<8x32xf32, #tpu.memory_space<vmem>>, vector<1x32xf32>
    %c4 = arith.constant 4 : index
    %c0_7 = arith.constant 0 : index
    %6 = vector.load %arg8[%c4, %c0_7] : memref<8x32xf32, #tpu.memory_space<vmem>>, vector<1x32xf32>
    %c5 = arith.constant 5 : index
    %c0_8 = arith.constant 0 : index
    %7 = vector.load %arg8[%c5, %c0_8] : memref<8x32xf32, #tpu.memory_space<vmem>>, vector<1x32xf32>
    %c0_9 = arith.constant 0 : index
    %c0_10 = arith.constant 0 : index
    %8 = vector.load %arg2[%c0_9, %c0_10] : memref<32x96xf32, #tpu.memory_space<vmem>>, vector<32x96xf32>
    %cst = arith.constant dense<0.000000e+00> : vector<8x96xf32>
    %9 = tpu.matmul %1, %8, %cst {dimension_numbers = #tpu.dot_dimension_numbers<[1], [0], [0], [1], [0, 0, 1, 1], [], []>} : vector<8x32xf32>, vector<32x96xf32>, vector<8x96xf32> -> vector<8x96xf32>
    %c0_11 = arith.constant 0 : index
    %c0_12 = arith.constant 0 : index
    %10 = vector.load %arg3[%c0_11, %c0_12] : memref<1x96xf32, #tpu.memory_space<vmem>>, vector<1x96xf32>
    %11 = vector.broadcast %10 : vector<1x96xf32> to vector<8x96xf32>
    %12 = arith.addf %9, %11 : vector<8x96xf32>
    %13 = vector.extract_strided_slice %12 {offsets = [0, 0], sizes = [8, 8], strides = [1, 1]} : vector<8x96xf32> to vector<8x8xf32>
    %cst_13 = arith.constant 0.353553385 : f32
    %14 = vector.broadcast %cst_13 : f32 to vector<8x8xf32>
    %15 = arith.mulf %13, %14 : vector<8x8xf32>
    %16 = vector.extract_strided_slice %12 {offsets = [0, 32], sizes = [8, 8], strides = [1, 1]} : vector<8x96xf32> to vector<8x8xf32>
    %17 = vector.extract_strided_slice %12 {offsets = [0, 64], sizes = [8, 8], strides = [1, 1]} : vector<8x96xf32> to vector<8x8xf32>
    %cst_14 = arith.constant dense<0.000000e+00> : vector<8x8xf32>
    %18 = tpu.matmul %15, %16, %cst_14 {dimension_numbers = #tpu.dot_dimension_numbers<[1], [1], [0], [0], [0, 0, 1, 0], [], []>} : vector<8x8xf32>, vector<8x8xf32>, vector<8x8xf32> -> vector<8x8xf32>
    %cst_15 = arith.constant dense<0xFF800000> : vector<8xf32>
    %19 = vector.multi_reduction <maximumf>, %18, %cst_15 [1] : vector<8x8xf32> to vector<8xf32>
    %20 = vector.shape_cast %19 : vector<8xf32> to vector<8x1xf32>
    %21 = vector.broadcast %20 : vector<8x1xf32> to vector<8x8xf32>
    %22 = arith.subf %18, %21 : vector<8x8xf32>
    %23 = math.exp %22 : vector<8x8xf32>
    %cst_16 = arith.constant dense<0.000000e+00> : vector<8xf32>
    %24 = vector.multi_reduction <add>, %23, %cst_16 [1] : vector<8x8xf32> to vector<8xf32>
    %25 = vector.shape_cast %24 : vector<8xf32> to vector<8x1xf32>
    %26 = tpu.reciprocal %25 {approx = true} : vector<8x1xf32> -> vector<8x1xf32>
    %27 = vector.broadcast %26 : vector<8x1xf32> to vector<8x8xf32>
    %28 = arith.mulf %23, %27 : vector<8x8xf32>
    %cst_17 = arith.constant dense<0.000000e+00> : vector<8x8xf32>
    %29 = tpu.matmul %28, %17, %cst_17 {dimension_numbers = #tpu.dot_dimension_numbers<[1], [0], [0], [1], [0, 0, 1, 1], [], []>} : vector<8x8xf32>, vector<8x8xf32>, vector<8x8xf32> -> vector<8x8xf32>
    %30 = vector.extract_strided_slice %12 {offsets = [0, 8], sizes = [8, 8], strides = [1, 1]} : vector<8x96xf32> to vector<8x8xf32>
    %cst_18 = arith.constant 0.353553385 : f32
    %31 = vector.broadcast %cst_18 : f32 to vector<8x8xf32>
    %32 = arith.mulf %30, %31 : vector<8x8xf32>
    %33 = vector.extract_strided_slice %12 {offsets = [0, 40], sizes = [8, 8], strides = [1, 1]} : vector<8x96xf32> to vector<8x8xf32>
    %34 = vector.extract_strided_slice %12 {offsets = [0, 72], sizes = [8, 8], strides = [1, 1]} : vector<8x96xf32> to vector<8x8xf32>
    %cst_19 = arith.constant dense<0.000000e+00> : vector<8x8xf32>
    %35 = tpu.matmul %32, %33, %cst_19 {dimension_numbers = #tpu.dot_dimension_numbers<[1], [1], [0], [0], [0, 0, 1, 0], [], []>} : vector<8x8xf32>, vector<8x8xf32>, vector<8x8xf32> -> vector<8x8xf32>
    %cst_20 = arith.constant dense<0xFF800000> : vector<8xf32>
    %36 = vector.multi_reduction <maximumf>, %35, %cst_20 [1] : vector<8x8xf32> to vector<8xf32>
    %37 = vector.shape_cast %36 : vector<8xf32> to vector<8x1xf32>
    %38 = vector.broadcast %37 : vector<8x1xf32> to vector<8x8xf32>
    %39 = arith.subf %35, %38 : vector<8x8xf32>
    %40 = math.exp %39 : vector<8x8xf32>
    %cst_21 = arith.constant dense<0.000000e+00> : vector<8xf32>
    %41 = vector.multi_reduction <add>, %40, %cst_21 [1] : vector<8x8xf32> to vector<8xf32>
    %42 = vector.shape_cast %41 : vector<8xf32> to vector<8x1xf32>
    %43 = tpu.reciprocal %42 {approx = true} : vector<8x1xf32> -> vector<8x1xf32>
    %44 = vector.broadcast %43 : vector<8x1xf32> to vector<8x8xf32>
    %45 = arith.mulf %40, %44 : vector<8x8xf32>
    %cst_22 = arith.constant dense<0.000000e+00> : vector<8x8xf32>
    %46 = tpu.matmul %45, %34, %cst_22 {dimension_numbers = #tpu.dot_dimension_numbers<[1], [0], [0], [1], [0, 0, 1, 1], [], []>} : vector<8x8xf32>, vector<8x8xf32>, vector<8x8xf32> -> vector<8x8xf32>
    %47 = vector.extract_strided_slice %12 {offsets = [0, 16], sizes = [8, 8], strides = [1, 1]} : vector<8x96xf32> to vector<8x8xf32>
    %cst_23 = arith.constant 0.353553385 : f32
    %48 = vector.broadcast %cst_23 : f32 to vector<8x8xf32>
    %49 = arith.mulf %47, %48 : vector<8x8xf32>
    %50 = vector.extract_strided_slice %12 {offsets = [0, 48], sizes = [8, 8], strides = [1, 1]} : vector<8x96xf32> to vector<8x8xf32>
    %51 = vector.extract_strided_slice %12 {offsets = [0, 80], sizes = [8, 8], strides = [1, 1]} : vector<8x96xf32> to vector<8x8xf32>
    %cst_24 = arith.constant dense<0.000000e+00> : vector<8x8xf32>
    %52 = tpu.matmul %49, %50, %cst_24 {dimension_numbers = #tpu.dot_dimension_numbers<[1], [1], [0], [0], [0, 0, 1, 0], [], []>} : vector<8x8xf32>, vector<8x8xf32>, vector<8x8xf32> -> vector<8x8xf32>
    %cst_25 = arith.constant dense<0xFF800000> : vector<8xf32>
    %53 = vector.multi_reduction <maximumf>, %52, %cst_25 [1] : vector<8x8xf32> to vector<8xf32>
    %54 = vector.shape_cast %53 : vector<8xf32> to vector<8x1xf32>
    %55 = vector.broadcast %54 : vector<8x1xf32> to vector<8x8xf32>
    %56 = arith.subf %52, %55 : vector<8x8xf32>
    %57 = math.exp %56 : vector<8x8xf32>
    %cst_26 = arith.constant dense<0.000000e+00> : vector<8xf32>
    %58 = vector.multi_reduction <add>, %57, %cst_26 [1] : vector<8x8xf32> to vector<8xf32>
    %59 = vector.shape_cast %58 : vector<8xf32> to vector<8x1xf32>
    %60 = tpu.reciprocal %59 {approx = true} : vector<8x1xf32> -> vector<8x1xf32>
    %61 = vector.broadcast %60 : vector<8x1xf32> to vector<8x8xf32>
    %62 = arith.mulf %57, %61 : vector<8x8xf32>
    %cst_27 = arith.constant dense<0.000000e+00> : vector<8x8xf32>
    %63 = tpu.matmul %62, %51, %cst_27 {dimension_numbers = #tpu.dot_dimension_numbers<[1], [0], [0], [1], [0, 0, 1, 1], [], []>} : vector<8x8xf32>, vector<8x8xf32>, vector<8x8xf32> -> vector<8x8xf32>
    %64 = vector.extract_strided_slice %12 {offsets = [0, 24], sizes = [8, 8], strides = [1, 1]} : vector<8x96xf32> to vector<8x8xf32>
    %cst_28 = arith.constant 0.353553385 : f32
    %65 = vector.broadcast %cst_28 : f32 to vector<8x8xf32>
    %66 = arith.mulf %64, %65 : vector<8x8xf32>
    %67 = vector.extract_strided_slice %12 {offsets = [0, 56], sizes = [8, 8], strides = [1, 1]} : vector<8x96xf32> to vector<8x8xf32>
    %68 = vector.extract_strided_slice %12 {offsets = [0, 88], sizes = [8, 8], strides = [1, 1]} : vector<8x96xf32> to vector<8x8xf32>
    %cst_29 = arith.constant dense<0.000000e+00> : vector<8x8xf32>
    %69 = tpu.matmul %66, %67, %cst_29 {dimension_numbers = #tpu.dot_dimension_numbers<[1], [1], [0], [0], [0, 0, 1, 0], [], []>} : vector<8x8xf32>, vector<8x8xf32>, vector<8x8xf32> -> vector<8x8xf32>
    %cst_30 = arith.constant dense<0xFF800000> : vector<8xf32>
    %70 = vector.multi_reduction <maximumf>, %69, %cst_30 [1] : vector<8x8xf32> to vector<8xf32>
    %71 = vector.shape_cast %70 : vector<8xf32> to vector<8x1xf32>
    %72 = vector.broadcast %71 : vector<8x1xf32> to vector<8x8xf32>
    %73 = arith.subf %69, %72 : vector<8x8xf32>
    %74 = math.exp %73 : vector<8x8xf32>
    %cst_31 = arith.constant dense<0.000000e+00> : vector<8xf32>
    %75 = vector.multi_reduction <add>, %74, %cst_31 [1] : vector<8x8xf32> to vector<8xf32>
    %76 = vector.shape_cast %75 : vector<8xf32> to vector<8x1xf32>
    %77 = tpu.reciprocal %76 {approx = true} : vector<8x1xf32> -> vector<8x1xf32>
    %78 = vector.broadcast %77 : vector<8x1xf32> to vector<8x8xf32>
    %79 = arith.mulf %74, %78 : vector<8x8xf32>
    %cst_32 = arith.constant dense<0.000000e+00> : vector<8x8xf32>
    %80 = tpu.matmul %79, %68, %cst_32 {dimension_numbers = #tpu.dot_dimension_numbers<[1], [0], [0], [1], [0, 0, 1, 1], [], []>} : vector<8x8xf32>, vector<8x8xf32>, vector<8x8xf32> -> vector<8x8xf32>
    %81 = tpu.concatenate %29, %46, %63, %80 in 1 : vector<8x8xf32>, vector<8x8xf32>, vector<8x8xf32>, vector<8x8xf32> -> vector<8x32xf32>
    %c0_33 = arith.constant 0 : index
    %c0_34 = arith.constant 0 : index
    %82 = vector.load %arg4[%c0_33, %c0_34] : memref<32x32xf32, #tpu.memory_space<vmem>>, vector<32x32xf32>
    %cst_35 = arith.constant dense<0.000000e+00> : vector<8x32xf32>
    %83 = tpu.matmul %81, %82, %cst_35 {dimension_numbers = #tpu.dot_dimension_numbers<[1], [0], [0], [1], [0, 0, 1, 1], [], []>} : vector<8x32xf32>, vector<32x32xf32>, vector<8x32xf32> -> vector<8x32xf32>
    %84 = vector.broadcast %2 : vector<1x32xf32> to vector<8x32xf32>
    %85 = arith.addf %83, %84 : vector<8x32xf32>
    %86 = arith.addf %1, %85 : vector<8x32xf32>
    %cst_36 = arith.constant dense<0.000000e+00> : vector<8xf32>
    %87 = vector.multi_reduction <add>, %86, %cst_36 [1] : vector<8x32xf32> to vector<8xf32>
    %88 = vector.shape_cast %87 : vector<8xf32> to vector<8x1xf32>
    %cst_37 = arith.constant 3.200000e+01 : f32
    %89 = vector.broadcast %cst_37 : f32 to vector<8x1xf32>
    %90 = arith.divf %88, %89 : vector<8x1xf32>
    %91 = arith.mulf %86, %86 : vector<8x32xf32>
    %cst_38 = arith.constant dense<0.000000e+00> : vector<8xf32>
    %92 = vector.multi_reduction <add>, %91, %cst_38 [1] : vector<8x32xf32> to vector<8xf32>
    %93 = vector.shape_cast %92 : vector<8xf32> to vector<8x1xf32>
    %cst_39 = arith.constant 3.200000e+01 : f32
    %94 = vector.broadcast %cst_39 : f32 to vector<8x1xf32>
    %95 = arith.divf %93, %94 : vector<8x1xf32>
    %96 = arith.mulf %90, %90 : vector<8x1xf32>
    %97 = arith.subf %95, %96 : vector<8x1xf32>
    %cst_40 = arith.constant 0.000000e+00 : f32
    %98 = vector.broadcast %cst_40 : f32 to vector<8x1xf32>
    %99 = arith.maximumf %97, %98 : vector<8x1xf32>
    %100 = vector.broadcast %90 : vector<8x1xf32> to vector<8x32xf32>
    %101 = arith.subf %86, %100 : vector<8x32xf32>
    %cst_41 = arith.constant 9.99999974E-6 : f32
    %102 = vector.broadcast %cst_41 : f32 to vector<8x1xf32>
    %103 = arith.addf %99, %102 : vector<8x1xf32>
    %104 = math.rsqrt %103 : vector<8x1xf32>
    %105 = vector.broadcast %104 : vector<8x1xf32> to vector<8x32xf32>
    %106 = arith.mulf %101, %105 : vector<8x32xf32>
    %107 = vector.broadcast %3 : vector<1x32xf32> to vector<8x32xf32>
    %108 = arith.mulf %106, %107 : vector<8x32xf32>
    %109 = vector.broadcast %4 : vector<1x32xf32> to vector<8x32xf32>
    %110 = arith.addf %108, %109 : vector<8x32xf32>
    %c0_42 = arith.constant 0 : index
    %c0_43 = arith.constant 0 : index
    %111 = vector.load %arg5[%c0_42, %c0_43] : memref<32x64xf32, #tpu.memory_space<vmem>>, vector<32x64xf32>
    %cst_44 = arith.constant dense<0.000000e+00> : vector<8x64xf32>
    %112 = tpu.matmul %110, %111, %cst_44 {dimension_numbers = #tpu.dot_dimension_numbers<[1], [0], [0], [1], [0, 0, 1, 1], [], []>} : vector<8x32xf32>, vector<32x64xf32>, vector<8x64xf32> -> vector<8x64xf32>
    %c0_45 = arith.constant 0 : index
    %c0_46 = arith.constant 0 : index
    %113 = vector.load %arg6[%c0_45, %c0_46] : memref<1x64xf32, #tpu.memory_space<vmem>>, vector<1x64xf32>
    %114 = vector.broadcast %113 : vector<1x64xf32> to vector<8x64xf32>
    %115 = arith.addf %112, %114 : vector<8x64xf32>
    %cst_47 = arith.constant 0.000000e+00 : f32
    %116 = vector.broadcast %cst_47 : f32 to vector<8x64xf32>
    %117 = arith.maximumf %115, %116 : vector<8x64xf32>
    %c0_48 = arith.constant 0 : index
    %c0_49 = arith.constant 0 : index
    %118 = vector.load %arg7[%c0_48, %c0_49] : memref<64x32xf32, #tpu.memory_space<vmem>>, vector<64x32xf32>
    %cst_50 = arith.constant dense<0.000000e+00> : vector<8x32xf32>
    %119 = tpu.matmul %117, %118, %cst_50 {dimension_numbers = #tpu.dot_dimension_numbers<[1], [0], [0], [1], [0, 0, 1, 1], [], []>} : vector<8x64xf32>, vector<64x32xf32>, vector<8x32xf32> -> vector<8x32xf32>
    %120 = vector.broadcast %7 : vector<1x32xf32> to vector<8x32xf32>
    %121 = arith.addf %119, %120 : vector<8x32xf32>
    %122 = arith.addf %110, %121 : vector<8x32xf32>
    %cst_51 = arith.constant dense<0.000000e+00> : vector<8xf32>
    %123 = vector.multi_reduction <add>, %122, %cst_51 [1] : vector<8x32xf32> to vector<8xf32>
    %124 = vector.shape_cast %123 : vector<8xf32> to vector<8x1xf32>
    %cst_52 = arith.constant 3.200000e+01 : f32
    %125 = vector.broadcast %cst_52 : f32 to vector<8x1xf32>
    %126 = arith.divf %124, %125 : vector<8x1xf32>
    %127 = arith.mulf %122, %122 : vector<8x32xf32>
    %cst_53 = arith.constant dense<0.000000e+00> : vector<8xf32>
    %128 = vector.multi_reduction <add>, %127, %cst_53 [1] : vector<8x32xf32> to vector<8xf32>
    %129 = vector.shape_cast %128 : vector<8xf32> to vector<8x1xf32>
    %cst_54 = arith.constant 3.200000e+01 : f32
    %130 = vector.broadcast %cst_54 : f32 to vector<8x1xf32>
    %131 = arith.divf %129, %130 : vector<8x1xf32>
    %132 = arith.mulf %126, %126 : vector<8x1xf32>
    %133 = arith.subf %131, %132 : vector<8x1xf32>
    %cst_55 = arith.constant 0.000000e+00 : f32
    %134 = vector.broadcast %cst_55 : f32 to vector<8x1xf32>
    %135 = arith.maximumf %133, %134 : vector<8x1xf32>
    %136 = vector.broadcast %126 : vector<8x1xf32> to vector<8x32xf32>
    %137 = arith.subf %122, %136 : vector<8x32xf32>
    %cst_56 = arith.constant 9.99999974E-6 : f32
    %138 = vector.broadcast %cst_56 : f32 to vector<8x1xf32>
    %139 = arith.addf %135, %138 : vector<8x1xf32>
    %140 = math.rsqrt %139 : vector<8x1xf32>
    %141 = vector.broadcast %140 : vector<8x1xf32> to vector<8x32xf32>
    %142 = arith.mulf %137, %141 : vector<8x32xf32>
    %143 = vector.broadcast %5 : vector<1x32xf32> to vector<8x32xf32>
    %144 = arith.mulf %142, %143 : vector<8x32xf32>
    %145 = vector.broadcast %6 : vector<1x32xf32> to vector<8x32xf32>
    %146 = arith.addf %144, %145 : vector<8x32xf32>
    %c0_57 = arith.constant 0 : index
    %c0_58 = arith.constant 0 : index
    %c0_59 = arith.constant 0 : index
    %147 = vector.load %arg9[%c0_57, %c0_58, %c0_59] : memref<1x8x32xf32, #tpu.memory_space<vmem>>, vector<1x8x32xf32>
    %148 = vector.shape_cast %147 : vector<1x8x32xf32> to vector<8x32xf32>
    %149 = vector.shape_cast %146 : vector<8x32xf32> to vector<1x8x32xf32>
    tpu.vector_store %arg9[%c0_57, %c0_58, %c0_59], %149 {strides = array<i32>} : memref<1x8x32xf32, #tpu.memory_space<vmem>>, vector<1x8x32xf32>,
    return
  }
  func.func @transform_0(%arg0: i32) -> (i32, i32, i32) {
    %c0_i32 = arith.constant 0 : i32
    %c0_i32_0 = arith.constant 0 : i32
    %c0_i32_1 = arith.constant 0 : i32
    return %arg0, %c0_i32, %c0_i32_0 : i32, i32, i32
  }
  func.func @transform_1(%arg0: i32) -> (i32, i32) {
    %c0_i32 = arith.constant 0 : i32
    %c0_i32_0 = arith.constant 0 : i32
    %c0_i32_1 = arith.constant 0 : i32
    return %c0_i32, %c0_i32_0 : i32, i32
  }
  func.func @transform_2(%arg0: i32) -> (i32, i32) {
    %c0_i32 = arith.constant 0 : i32
    %c0_i32_0 = arith.constant 0 : i32
    %c0_i32_1 = arith.constant 0 : i32
    return %c0_i32, %c0_i32_0 : i32, i32
  }
  func.func @transform_3(%arg0: i32) -> (i32, i32) {
    %c0_i32 = arith.constant 0 : i32
    %c0_i32_0 = arith.constant 0 : i32
    %c0_i32_1 = arith.constant 0 : i32
    return %c0_i32, %c0_i32_0 : i32, i32
  }
  func.func @transform_4(%arg0: i32) -> (i32, i32) {
    %c0_i32 = arith.constant 0 : i32
    %c0_i32_0 = arith.constant 0 : i32
    %c0_i32_1 = arith.constant 0 : i32
    return %c0_i32, %c0_i32_0 : i32, i32
  }
  func.func @transform_5(%arg0: i32) -> (i32, i32) {
    %c0_i32 = arith.constant 0 : i32
    %c0_i32_0 = arith.constant 0 : i32
    %c0_i32_1 = arith.constant 0 : i32
    return %c0_i32, %c0_i32_0 : i32, i32
  }
  func.func @transform_6(%arg0: i32) -> (i32, i32) {
    %c0_i32 = arith.constant 0 : i32
    %c0_i32_0 = arith.constant 0 : i32
    %c0_i32_1 = arith.constant 0 : i32
    return %c0_i32, %c0_i32_0 : i32, i32
  }
  func.func @transform_7(%arg0: i32) -> (i32, i32) {
    %c0_i32 = arith.constant 0 : i32
    %c0_i32_0 = arith.constant 0 : i32
    %c0_i32_1 = arith.constant 0 : i32
    return %c0_i32, %c0_i32_0 : i32, i32
  }
  func.func @transform_8(%arg0: i32) -> (i32, i32, i32) {
    %c0_i32 = arith.constant 0 : i32
    %c0_i32_0 = arith.constant 0 : i32
    %c0_i32_1 = arith.constant 0 : i32
    return %arg0, %c0_i32, %c0_i32_0 : i32, i32, i32
  }
}

</mosaic_0001>

<bundles_post_ra>
// kernel: transformer_encoder_layer.1
= control target key start
LH: loop header
LB: loop body
LE: loop exit
PB: predicated region body
PF: predicated region fallthrough
CT: control target
= control target key end

     0   :  { %s1711_s27 = smov 0   ;;  %s1915_s0 = inlined_call_operand.vmem [shape: f32[2,8,32], index: 0, kind: input, shape index: {}]   ;;  %s1916_s1 = inlined_call_operand.vmem [shape: f32[32,96], index: 1, kind: input, shape index: {}]   ;;  %s1917_s2 = inlined_call_operand.vmem [shape: f32[1,96], index: 2, kind: input, shape index: {}]   ;;  %s1918_s3 = inlined_call_operand.vmem [shape: f32[32,32], index: 3, kind: input, shape index: {}]   ;;  %s1919_s4 = inlined_call_operand.vmem [shape: f32[32,64], index: 4, kind: input, shape index: {}]   ;;  %s1920_s5 = inlined_call_operand.vmem [shape: f32[1,64], index: 5, kind: input, shape index: {}]   ;;  %s1921_s6 = inlined_call_operand.vmem [shape: f32[64,32], index: 6, kind: input, shape index: {}]   ;;  %s1922_s7 = inlined_call_operand.vmem [shape: f32[8,32], index: 7, kind: input, shape index: {}]   ;;  %s1923_s8 = inlined_call_operand.vmem [shape: f32[2,8,32], index: 8, kind: output, shape index: {}]  }
   0x1 LB: > { %s1433_s28 = sadd.s32 4294967295, %s1648_s27   ;;  %p1437_p0 = scmp.ge.s32.totalorder %s1648_s27, 1  ;;  %s1648_s27 = sphi %s1711_s27, %s18_s27  }
   0x2   : > { %p261_p1 = scmp.lt.s32.totalorder %s1648_s27, 3 }
   0x4   : > { %p262_p2 = pnand %p1437_p0, %p261_p1 }
   0x5   : > { %p293_p3 = scmp.lt.s32.totalorder (!%p262_p2), %s1433_s28, 1  ;;  %s1652_s21 = smov (!%p262_p2), 96  }
   0x6   : > { %265 = sbr.rel (%p262_p2) target bundleno = 2136 (0x858), region = 52  ;;  %s1653_s22 = smov (!%p262_p2), 120  }
   0x7   : > { %s1654_s23 = smov (!%p262_p2), 88   ;;  %s1655_s24 = smov (!%p262_p2), 80  }
   0x8   : > { %s1656_s25 = smov (!%p262_p2), 112   ;;  %s1657_s26 = smov (!%p262_p2), 72  }
   0x9   : > { %s1658_s29 = smov (!%p262_p2), 104   ;;  %s1659_s30 = smov (!%p262_p2), 56  }
   0xa   : > { %s1660_s9 = smov (!%p262_p2), 64   ;;  %s1661_s10 = smov (!%p262_p2), 48  }
   0xb   : > { %v311_v0 = vld [vmem:[%s1916_s1 + $0x18] sm:$0xff]  ;;  %v1650_v1 = vmov 0.0   ;;  %v310_v2 = vld [vmem:[%s1916_s1 + $0x10] sm:$0xff]  ;;  %vm1651_vm0 = vmmov 0   ;;  %s1925_s28 = smov (!%p293_p3, %s1433_s28), 1  ;;  %v309_v3 = vld [vmem:[%s1916_s1 + $0x8] sm:$0xff] }
   0xc   : > { %1506 = vmatprep.subr.mxu1 %v1650_v1  ;;  %1514 = vmatprep.mubr.msk.f32.mxu1 %vm1651_vm0, %v1650_v1  ;;  %s1438_s13 = sshll.u32 %s1925_s28, 3  ;;  %v308_v4 = vld [vmem:[%s1916_s1] sm:$0xff]  ;;  %vm319_vm1 = vcmask 261120   ;;  %vm397_vm2 = vcmask 64512   ;;  %s1662_s11 = smov 40   ;;  %vm1068_vm3 = vcmask 130048  }
   0xd   : > { %1507 = vmatpush3.msra.mxu1 %v311_v0  ;;  %1527 = vmatprep.subr.mxu0 %v1650_v1  ;;  %s296_s18 = scalar_lea.vmem %s1915_s0, %s1438_s13  ;;  %v1440_v6 = vld [vmem:[%s1917_s2] ss:$0 sm:$0xff]  ;;  %s1663_s15 = smov 8   ;;  %vm1070_vm4 = vcmask 195584   ;;  %vm1278_vm5 = vcmask 523264  }
   0xe   : > { %1508 = vmatprep.subr.mxu1 %v1650_v1  ;;  %1529 = vmatprep.mubr.msk.f32.mxu0 %vm1651_vm0, %v1650_v1  ;;  %v1747_v5 = vld [vmem:[%s296_s18] sm:$0xff] }
   0xf   : > { %1509 = vmatpush3.msra.mxu1 %v310_v2 }
  0x10   : > { %1510 = vmatprep.subr.mxu1 %v1650_v1 }
  0x11   : > { %1511 = vmatpush3.msra.mxu1 %v309_v3  ;;  %v1075_v3 = vld [vmem:[%s1918_s3 + $0x18] sm:$0xff] }
  0x12   : > { %1512 = vmatprep.subr.mxu1 %v1650_v1 }
  0x13   : > { %1513 = vmatpush3.msra.mxu1 %v308_v4 }
  0x14   : > { %1515 = vmatmul.mubr.msk.f32.vlgmr.msra.gmra.mxu1 %vm319_vm1, %v1747_v5  ;;  %1517 = vmatprep.subr.mxu1 %v1650_v1 }
  0x15   : > { %1519 = vmatprep.mubr.msk.f32.mxu1 %vm1651_vm0, %v1650_v1 }
  0xd4   : > { %v389_v7 = vpop.f32.mrf.mxu1 }
  0xd5   : > { %v1758_v8 = vadd.f32 %v1440_v6, %v389_v7 }
  0xd6   : > { %v1516_v9 = vpop.f32.mrf.mxu1 }
  0xd7   : > { %395 = vrot.lane.b32.xlu0 %v1758_v8, %s1652_s21  ;;  %v393_v10 = vmul.f32 0.35355338, %v1758_v8  ;;  %v1074_v9 = vld [vmem:[%s1918_s3 + $0x10] sm:$0xff] }
  0xd9   : > { %560 = vrot.lane.b32.xlu1 %v393_v10, %s1653_s22  ;;  %s1664_s22 = smov 16  }
  0xdb   : > { %562 = vrot.lane.b32.xlu0 %v1758_v8, %s1654_s23  ;;  %s1665_s23 = smov 24  }
  0xdd   : > { %727 = vrot.lane.b32.xlu1 %v1758_v8, %s1655_s24 }
  0xdf   : > { %725 = vrot.lane.b32.xlu0 %v393_v10, %s1656_s25 }
  0xe1   : > { %892 = vrot.lane.b32.xlu1 %v1758_v8, %s1657_s26  ;;  %s300_s26 = scalar_lea.vmem %s1923_s8, %s1438_s13 }
  0xe3   : > { %890 = vrot.lane.b32.xlu0 %v393_v10, %s1658_s29 }
 0x149   : > { %v396_v11 = vpop.permute.xlu0 %395 }
 0x14a   : > { %1518 = vmatpush3.xpose.msk.msra.mxu1 %vm397_vm2, %v396_v11  ;;  %v1072_v11 = vld [vmem:[%s1918_s3] sm:$0xff] }
 0x14b   : > { %v561_v12 = vpop.permute.xlu1 %560  ;;  %1522 = vmatprep.subr.mxu1 %v1650_v1 }
 0x14d   : > { %v563_v13 = vpop.permute.xlu0 %562  ;;  %1520 = vmatmul.mubr.msk.f32.vlgmr.msra.gmra.mxu1 %vm397_vm2, %v393_v10  ;;  %v1073_v10 = vld [vmem:[%s1918_s3 + $0x8] sm:$0xff] }
 0x14e   : > { %1528 = vmatpush3.xpose.msk.msra.mxu0 %vm397_vm2, %v563_v13  ;;  %1524 = vmatprep.mubr.msk.f32.mxu1 %vm1651_vm0, %v1650_v1 }
 0x14f   : > { %v728_v14 = vpop.permute.xlu1 %727  ;;  %1537 = vmatprep.subr.mxu0 %v1650_v1 }
 0x151   : > { %1530 = vmatmul.mubr.msk.f32.vlgmr.msra.gmra.mxu0 %vm397_vm2, %v561_v12  ;;  %v726_v15 = vpop.permute.xlu0 %725 }
 0x152   : > { %1538 = vmatpush3.xpose.msk.msra.mxu0 %vm397_vm2, %v728_v14  ;;  %1539 = vmatprep.mubr.msk.f32.mxu0 %vm1651_vm0, %v1650_v1 }
 0x153   : > { %1547 = vmatprep.subr.mxu0 %v1650_v1  ;;  %v893_v16 = vpop.permute.xlu1 %892 }
 0x155   : > { %1540 = vmatmul.mubr.msk.f32.vlgmr.msra.gmra.mxu0 %vm397_vm2, %v726_v15  ;;  %v891_v17 = vpop.permute.xlu0 %890 }
 0x156   : > { %1548 = vmatpush3.xpose.msk.msra.mxu0 %vm397_vm2, %v893_v16  ;;  %1549 = vmatprep.mubr.msk.f32.mxu0 %vm1651_vm0, %v1650_v1 }
 0x157   : > { %1557 = vmatprep.subr.mxu0 %v1650_v1 }
 0x159   : > { %1550 = vmatmul.mubr.msk.f32.vlgmr.msra.gmra.mxu0 %vm397_vm2, %v891_v17 }
 0x15a   : > { %1565 = vmatprep.mubr.msk.f32.mxu0 %vm1651_vm0, %v1650_v1  ;;  %1558 = vmatpush3.msra.mxu0 %v1075_v3 }
 0x15b   : > { %1559 = vmatprep.subr.mxu0 %v1650_v1 }
 0x15c   : > { %1560 = vmatpush3.msra.mxu0 %v1074_v9 }
 0x15d   : > { %1561 = vmatprep.subr.mxu0 %v1650_v1 }
 0x15e   : > { %1562 = vmatpush3.msra.mxu0 %v1073_v10 }
 0x15f   : > { %1563 = vmatprep.subr.mxu0 %v1650_v1 }
 0x160   : > { %1564 = vmatpush3.msra.mxu0 %v1072_v11 }
 0x161   : > { %1579 = vmatprep.subr.mxu0 %v1650_v1 }
 0x20d   : > { %v469_v18 = vpop.f32.mrf.mxu1 }
 0x20e   : > { %v473_v19 = vsel %vm397_vm2, %v469_v18, -inf }
 0x20f   : > { %474 = vmax.xlane.f32.xlu1 %v473_v19  ;;  %v1521_v20 = vpop.f32.mrf.mxu1 }
 0x211   : > { %v634_v21 = vpop.f32.mrf.mxu0 }
 0x212   : > { %v638_v22 = vsel %vm397_vm2, %v634_v21, -inf }
 0x213   : > { %639 = vmax.xlane.f32.xlu0 %v638_v22  ;;  %v1531_v23 = vpop.f32.mrf.mxu0  ;;  %v1454_v22 = vld [vmem:[%s1922_s7] ss:$0 sm:$0xff] }
 0x215   : > { %v799_v24 = vpop.f32.mrf.mxu0 }
 0x216   : > { %v803_v25 = vsel %vm397_vm2, %v799_v24, -inf }
 0x217   : > { %804 = vmax.xlane.f32.xlu0 %v803_v25  ;;  %v1541_v26 = vpop.f32.mrf.mxu0 }
 0x219   : > { %v964_v27 = vpop.f32.mrf.mxu0 }
 0x21a   : > { %v968_v28 = vsel %vm397_vm2, %v964_v27, -inf }
 0x21b   : > { %v1551_v29 = vpop.f32.mrf.mxu0  ;;  %969 = vmax.xlane.f32.xlu1 %v968_v28 }
 0x22c   : > { %649 = vrot.lane.b32.xlu1 %v1758_v8, %s1659_s30 }
 0x298   : > { %v475_v30 = vpop.xlane.xlu1 %474 }
 0x299   : > { %v476_v31 = vsub.f32 %v469_v18, %v475_v30  ;;  %v1184_v30 = vld [vmem:[%s1919_s4 + $0x18] sm:$0xff] }
 0x29b   : > { %v477_v32 = vmul.f32 1.442695, %v476_v31  ;;  %v1183_v31 = vld [vmem:[%s1919_s4 + $0x10] sm:$0xff] }
 0x29c   : > { %v640_v33 = vpop.xlane.xlu0 %639 }
 0x29d   : > { %1622 = vpow2.f32 %v477_v32  ;;  %v641_v34 = vsub.f32 %v634_v21, %v640_v33  ;;  %v1181_v32 = vld [vmem:[%s1919_s4] sm:$0xff]  ;;  %v1273_v33 = vld [vmem:[%s1921_s6 + $0x38] sm:$0xff] }
 0x29f   : > { %v642_v35 = vmul.f32 1.442695, %v641_v34  ;;  %v1272_v34 = vld [vmem:[%s1921_s6 + $0x30] sm:$0xff] }
 0x2a0   : > { %v805_v45 = vpop.xlane.xlu0 %804 }
 0x2a1   : > { %1624 = vpow2.f32 %v642_v35  ;;  %v806_v46 = vsub.f32 %v799_v24, %v805_v45  ;;  %v1271_v35 = vld [vmem:[%s1921_s6 + $0x28] sm:$0xff] }
 0x2a3   : > { %v807_v47 = vmul.f32 1.442695, %v806_v46 }
 0x2a4   : > { %v970_v36 = vpop.xlane.xlu1 %969 }
 0x2a5   : > { %v971_v37 = vsub.f32 %v964_v27, %v970_v36  ;;  %v1270_v36 = vld [vmem:[%s1921_s6 + $0x20] sm:$0xff] }
 0x2a7   : > { %v972_v38 = vmul.f32 1.442695, %v971_v37  ;;  %v1269_v37 = vld [vmem:[%s1921_s6 + $0x18] sm:$0xff] }
 0x2a8   : > { %v650_v50 = vpop.permute.xlu1 %649 }
 0x2a9   : > { %1626 = vpow2.f32 %v972_v38 }
 0x2aa   : > { %v1623_v39 = vpop.eup %1622  ;;  %1628 = vpow2.f32 %v807_v47 }
 0x2ab   : > { %v479_v40 = vsel %vm397_vm2, %v1623_v39, 0.0 }
 0x2ac   : > { %480 = vadd.xlane.f32.xlu0 %v479_v40 }
 0x2ae   : > { %v1625_v41 = vpop.eup %1624 }
 0x2af   : > { %v644_v42 = vsel %vm397_vm2, %v1625_v41, 0.0 }
 0x2b0   : > { %645 = vadd.xlane.f32.xlu1 %v644_v42 }
 0x2b6   : > { %v1627_v43 = vpop.eup %1626 }
 0x2b7   : > { %v974_v44 = vsel %vm397_vm2, %v1627_v43, 0.0  ;;  %v1629_v48 = vpop.eup %1628 }
 0x2b8   : > { %975 = vadd.xlane.f32.xlu1 %v974_v44  ;;  %v809_v49 = vsel %vm397_vm2, %v1629_v48, 0.0 }
 0x2c2   : > { %484 = vrot.lane.b32.xlu0 %v1758_v8, %s1660_s9 }
 0x2c9   : > { %814 = vrot.lane.b32.xlu1 %v1758_v8, %s1661_s10 }
 0x2e1   : > { %810 = vadd.xlane.f32.xlu0 %v809_v49 }
 0x2f7   : > { %979 = vrot.lane.b32.xlu0 %v1758_v8, %s1662_s11 }
 0x335   : > { %v481_v51 = vpop.xlane.xlu0 %480 }
 0x336   : > { %1630 = vrcp.f32 %v481_v51 }
 0x339   : > { %v485_v52 = vpop.permute.xlu0 %484  ;;  %v646_v53 = vpop.xlane.xlu1 %645 }
 0x33a   : > { %1632 = vrcp.f32 %v646_v53  ;;  %1523 = vmatpush3.msra.mxu1 %v485_v52  ;;  %v1268_v53 = vld [vmem:[%s1921_s6 + $0x10] sm:$0xff] }
 0x33b   : > { %1532 = vmatprep.subr.mxu1 %v1650_v1 }
 0x341   : > { %v976_v55 = vpop.xlane.xlu1 %975 }
 0x343   : > { %v1631_v54 = vpop.eup %1630 }
 0x344   : > { %v483_v56 = vmul.f32 %v1631_v54, %v1623_v39  ;;  %v1267_v54 = vld [vmem:[%s1921_s6 + $0x8] sm:$0xff] }
 0x345   : > { %v815_v59 = vpop.permute.xlu1 %814 }
 0x346   : > { %1525 = vmatmul.mubr.msk.f32.vlgmr.msra.gmra.mxu1 %vm397_vm2, %v483_v56  ;;  %v1458_v56 = vld [vmem:[%s1920_s5] ss:$0 sm:$0xff] }
 0x347   : > { %v1633_v57 = vpop.eup %1632  ;;  %1533 = vmatpush3.msra.mxu1 %v650_v50  ;;  %1534 = vmatprep.mubr.msk.f32.mxu1 %vm1651_vm0, %v1650_v1  ;;  %v1457_v50 = vld [vmem:[%s1922_s7 + $0x2] ss:$0 sm:$0xff] }
 0x348   : > { %1542 = vmatprep.subr.mxu1 %v1650_v1  ;;  %v648_v58 = vmul.f32 %v1633_v57, %v1625_v41 }
 0x34a   : > { %1535 = vmatmul.mubr.msk.f32.vlgmr.msra.gmra.mxu1 %vm397_vm2, %v648_v58 }
 0x34b   : > { %1543 = vmatpush3.msra.mxu1 %v815_v59  ;;  %1544 = vmatprep.mubr.msk.f32.mxu1 %vm1651_vm0, %v1650_v1 }
 0x34c   : > { %1552 = vmatprep.subr.mxu1 %v1650_v1 }
 0x36a   : > { %v811_v60 = vpop.xlane.xlu0 %810 }
 0x36b   : > { %1634 = vrcp.f32 %v811_v60 }
 0x36c   : > { %1636 = vrcp.f32 %v976_v55  ;;  %v1266_v55 = vld [vmem:[%s1921_s6] sm:$0xff] }
 0x36e   : > { %v980_v0 = vpop.permute.xlu0 %979 }
 0x378   : > { %v1635_v61 = vpop.eup %1634 }
 0x379   : > { %v813_v62 = vmul.f32 %v1635_v61, %v1629_v48  ;;  %v1637_v63 = vpop.eup %1636  ;;  %v1456_v48 = vld [vmem:[%s1922_s7 + $0x1] ss:$0 sm:$0xff]  ;;  %v1460_v61 = vld [vmem:[%s1922_s7 + $0x5] ss:$0 sm:$0xff] }
 0x37a   : > { %v978_v2 = vmul.f32 %v1637_v63, %v1627_v43 }
 0x37b   : > { %1545 = vmatmul.mubr.msk.f32.vlgmr.msra.gmra.mxu1 %vm397_vm2, %v813_v62 }
 0x37c   : > { %1553 = vmatpush3.msra.mxu1 %v980_v0  ;;  %1554 = vmatprep.mubr.msk.f32.mxu1 %vm1651_vm0, %v1650_v1 }
 0x37d   : > { %1568 = vmatprep.subr.mxu1 %v1650_v1 }
 0x37f   : > { %1555 = vmatmul.mubr.msk.f32.vlgmr.msra.gmra.mxu1 %vm397_vm2, %v978_v2 }
 0x380   : > { %1576 = vmatprep.mubr.msk.f32.mxu1 %vm1651_vm0, %v1650_v1  ;;  %1569 = vmatpush3.msra.mxu1 %v1184_v30 }
 0x381   : > { %1570 = vmatprep.subr.mxu1 %v1650_v1 }
 0x382   : > { %1571 = vmatpush3.msra.mxu1 %v1183_v31 }
 0x383   : > { %1572 = vmatprep.subr.mxu1 %v1650_v1 }
 0x406   : > { %v556_v4 = vpop.f32.mrf.mxu1 }
 0x408   : > { %v1526_v6 = vpop.f32.mrf.mxu1 }
 0x40a   : > { %v721_v7 = vpop.f32.mrf.mxu1 }
 0x40b   : > { %1056 = vrot.lane.b32.xlu1 %v721_v7, %s1663_s15 }
 0x40c   : > { %v1536_v8 = vpop.f32.mrf.mxu1 }
 0x43b   : > { %v886_v12 = vpop.f32.mrf.mxu1 }
 0x43c   : > { %1060 = vrot.lane.b32.xlu0 %v886_v12, %s1664_s22 }
 0x43d   : > { %v1546_v13 = vpop.f32.mrf.mxu1 }
 0x43f   : > { %v1051_v14 = vpop.f32.mrf.mxu1 }
 0x440   : > { %1064 = vrot.lane.b32.xlu1 %v1051_v14, %s1665_s23 }
 0x441   : > { %v1556_v15 = vpop.f32.mrf.mxu1 }
 0x47d   : > { %v1057_v16 = vpop.permute.xlu1 %1056 }
 0x47e   : > { %v1067_v18 = vsel %vm397_vm2, %v556_v4, %v1057_v16  ;;  %v1462_v16 = vld [vmem:[%s1922_s7 + $0x3] ss:$0 sm:$0xff] }
 0x4ae   : > { %v1061_v17 = vpop.permute.xlu0 %1060 }
 0x4af   : > { %v1069_v19 = vsel %vm1068_vm3, %v1067_v18, %v1061_v17  ;;  %v1463_v18 = vld [vmem:[%s1922_s7 + $0x4] ss:$0 sm:$0xff] }
 0x4b2   : > { %v1065_v20 = vpop.permute.xlu1 %1064 }
 0x4b3   : > { %v1071_v21 = vsel %vm1070_vm4, %v1069_v19, %v1065_v20 }
 0x4b4   : > { %1566 = vmatmul.mubr.msk.f32.vlgmr.msra.gmra.mxu0 %vm319_vm1, %v1071_v21 }
 0x4b5   : > { %1595 = vmatprep.mubr.msk.f32.mxu0 %vm1651_vm0, %v1650_v1  ;;  %1580 = vmatpush3.msra.mxu0 %v1273_v33 }
 0x4b6   : > { %1581 = vmatprep.subr.mxu0 %v1650_v1 }
 0x4b7   : > { %1582 = vmatpush3.msra.mxu0 %v1272_v34 }
 0x4b8   : > { %1583 = vmatprep.subr.mxu0 %v1650_v1 }
 0x4b9   : > { %1584 = vmatpush3.msra.mxu0 %v1271_v35 }
 0x4ba   : > { %1585 = vmatprep.subr.mxu0 %v1650_v1 }
 0x4bb   : > { %1586 = vmatpush3.msra.mxu0 %v1270_v36 }
 0x4bc   : > { %1587 = vmatprep.subr.mxu0 %v1650_v1 }
 0x4bd   : > { %1588 = vmatpush3.msra.mxu0 %v1269_v37 }
 0x4be   : > { %1589 = vmatprep.subr.mxu0 %v1650_v1 }
 0x4bf   : > { %1590 = vmatpush3.msra.mxu0 %v1268_v53 }
 0x4c0   : > { %1591 = vmatprep.subr.mxu0 %v1650_v1 }
 0x4c1   : > { %1592 = vmatpush3.msra.mxu0 %v1267_v54 }
 0x4c2   : > { %1593 = vmatprep.subr.mxu0 %v1650_v1 }
 0x4c3   : > { %1594 = vmatpush3.msra.mxu0 %v1266_v55 }
 0x574   : > { %v1149_v23 = vpop.f32.mrf.mxu0 }
 0x575   : > { %v1150_v24 = vadd.f32 %v1454_v22, %v1149_v23 }
 0x576   : > { %v1567_v25 = vpop.f32.mrf.mxu0 }
 0x577   : > { %v1153_v26 = vadd.f32 %v1150_v24, %v1747_v5  ;;  %v1182_v5 = vld [vmem:[%s1919_s4 + $0x8] sm:$0xff] }
 0x578   : > { %1573 = vmatpush3.msra.mxu1 %v1182_v5 }
 0x579   : > { %v1154_v27 = vsel %vm319_vm1, %v1153_v26, 0.0  ;;  %v1159_v28 = vmul.f32 %v1153_v26, %v1153_v26  ;;  %1574 = vmatprep.subr.mxu1 %v1650_v1 }
 0x57a   : > { %1155 = vadd.xlane.f32.xlu0 %v1154_v27  ;;  %1575 = vmatpush3.msra.mxu1 %v1181_v32 }
 0x57b   : > { %v1160_v29 = vsel %vm319_vm1, %v1159_v28, 0.0 }
 0x57c   : > { %1161 = vadd.xlane.f32.xlu1 %v1160_v29 }
 0x603   : > { %v1156_v38 = vpop.xlane.xlu0 %1155 }
 0x604   : > { %v1158_v39 = vmul.f32 0.03125, %v1156_v38 }
 0x605   : > { %v1162_v40 = vpop.xlane.xlu1 %1161 }
 0x606   : > { %v1164_v41 = vmul.f32 %v1158_v39, %v1158_v39  ;;  %v1163_v42 = vmul.f32 0.03125, %v1162_v40  ;;  %v1167_v46 = vsub.f32 %v1153_v26, %v1158_v39 }
 0x608   : > { %v1165_v43 = vsub.f32 %v1163_v42, %v1164_v41 }
 0x60a   : > { %v1166_v44 = vmax.f32 %v1165_v43, 0.0 }
 0x60c   : > { %v1168_v45 = vadd.f32 1e-05, %v1166_v44 }
 0x60e   : > { %1638 = vrsqrt.f32 %v1168_v45 }
 0x61b   : > { %v1639_v47 = vpop.eup %1638 }
 0x61c   : > { %v1170_v49 = vmul.f32 %v1639_v47, %v1167_v46 }
 0x61e   : > { %v1175_v51 = vmul.f32 %v1456_v48, %v1170_v49 }
 0x620   : > { %v1180_v52 = vadd.f32 %v1457_v50, %v1175_v51 }
 0x622   : > { %1577 = vmatmul.mubr.msk.f32.vlgmr.msra.gmra.mxu1 %vm319_vm1, %v1180_v52 }
 0x6e2   : > { %v1261_v57 = vpop.f32.mrf.mxu1 }
 0x6e3   : > { %v1262_v58 = vadd.f32 %v1458_v56, %v1261_v57 }
 0x6e4   : > { %v1578_v59 = vpop.f32.mrf.mxu1 }
 0x6e5   : > { %v1265_v60 = vmax.f32 %v1262_v58, 0.0 }
 0x6e7   : > { %1596 = vmatmul.mubr.msk.f32.vlgmr.msra.gmra.mxu0 %vm1278_vm5, %v1265_v60 }
 0x7a7   : > { %v1348_v62 = vpop.f32.mrf.mxu0 }
 0x7a8   : > { %v1349_v63 = vadd.f32 %v1460_v61, %v1348_v62 }
 0x7a9   : > { %v1597_v0 = vpop.f32.mrf.mxu0 }
 0x7aa   : > { %v1352_v2 = vadd.f32 %v1349_v63, %v1180_v52 }
 0x7ac   : > { %v1353_v1 = vsel %vm319_vm1, %v1352_v2, 0.0  ;;  %v1357_v3 = vmul.f32 %v1352_v2, %v1352_v2 }
 0x7ad   : > { %1354 = vadd.xlane.f32.xlu0 %v1353_v1 }
 0x7ae   : > { %v1358_v4 = vsel %vm319_vm1, %v1357_v3, 0.0 }
 0x7b1   : > { %1359 = vadd.xlane.f32.xlu0 %v1358_v4 }
 0x836   : > { %v1355_v6 = vpop.xlane.xlu0 %1354 }
 0x837   : > { %v1356_v7 = vmul.f32 0.03125, %v1355_v6 }
 0x839   : > { %v1362_v9 = vmul.f32 %v1356_v7, %v1356_v7  ;;  %v1365_v14 = vsub.f32 %v1352_v2, %v1356_v7 }
 0x83a   : > { %v1360_v8 = vpop.xlane.xlu0 %1359 }
 0x83b   : > { %v1361_v10 = vmul.f32 0.03125, %v1360_v8 }
 0x83d   : > { %v1363_v11 = vsub.f32 %v1361_v10, %v1362_v9 }
 0x83f   : > { %v1364_v12 = vmax.f32 %v1363_v11, 0.0 }
 0x841   : > { %v1366_v13 = vadd.f32 1e-05, %v1364_v12 }
 0x843   : > { %1640 = vrsqrt.f32 %v1366_v13 }
 0x850   : > { %v1641_v15 = vpop.eup %1640 }
 0x851   : > { %v1368_v17 = vmul.f32 %v1641_v15, %v1365_v14 }
 0x853   : > { %v1373_v19 = vmul.f32 %v1462_v16, %v1368_v17 }
 0x855   : > { %v1378_v20 = vadd.f32 %v1463_v18, %v1373_v19 }
 0x857   : > { %1379 = vst.msk [vmem:[%s300_s26] sm:$0xff] %vm319_vm1, %v1378_v20 }
 0x858 PF: > { %s18_s27 = sadd.s32 1, %s1648_s27  }
 0x859   : > { %p15_p4 = scmp.ge.s32.totalorder %s18_s27, 4  }
 0x85b   :  { %17 = sbr.rel (!%p15_p4) target bundleno = 1 (0x1), region = 82 }

</bundles_post_ra>
